<compile_context>
chip_gen: v7x
topology: tpu7x:2x2x1
jax: 0.10.0
libtpu: 0.0.40
codegen_flags: <defaults>
</compile_context>

<pallas_src>
import functools
import math

import jax
import jax.numpy as jnp
from jax import lax
from jax.experimental import pallas as pl
from jax.experimental.pallas import tpu as pltpu

F32 = jnp.float32
BF16 = jnp.bfloat16

# ----- model hyper-parameters (small, consistent with the module) -----
DIM_NODE = 64
DIM_EDGE = 32
DIM_ATTEN = 64
NUM_LAYERS = 2
NUM_HEADS = 8          # GNN heads; 8 so the 8 channels of self_attn_fc line up with `distance`
H_SA = 8               # MultiHeadAttention heads (hard-coded h=8 in the module)
D_K = DIM_NODE // 8
D_V = DIM_NODE // 8
D_N = DIM_NODE // NUM_HEADS
D_E = DIM_EDGE // NUM_HEADS
D_O = DIM_ATTEN // NUM_HEADS
LN_EPS = 1e-5
NEG_BIG = -1e9                       # additive cross-batch mask (softmax -> exactly 0)
NEG_FLT = -3.0e38                    # finite "-inf" identity for max reductions
VMEM_LIMIT = 48 * 1024 * 1024        # raised scoped-VMEM limit (safe on v5e/v6e/v7x)


# ---------------------------------------------------------------------------
# small in-kernel helpers (pure jnp, traced inside Pallas kernels)
# ---------------------------------------------------------------------------
def _ln(x, g, b):
    mu = jnp.mean(x, axis=-1, keepdims=True)
    var = jnp.mean((x - mu) ** 2, axis=-1, keepdims=True)
    return (x - mu) * lax.rsqrt(var + LN_EPS) * g + b


def _softmax_last(x):
    m = jnp.max(x, axis=-1, keepdims=True)
    e = jnp.exp(x - m)
    # internal attention softmax only: EUP approx reciprocal is fine here
    return e * pl.reciprocal(jnp.sum(e, axis=-1, keepdims=True), approx=True)


# ---------------------------------------------------------------------------
# Kernel 1 (once per forward): distance-weight MLP with the batch mask folded in.
#   out[pair, h] = self_attn_fc(feats[pair])[h]  if same_batch(pair) else -1e9
# ---------------------------------------------------------------------------
def _bias_kernel(f_ref, same_ref, w1, b1, g1, bb1, w2, b2, g2, bb2, w3, b3, o_ref):
    x = f_ref[...]
    h = jnp.maximum(jnp.dot(x, w1[...], preferred_element_type=F32) + b1[...], 0.0)
    h = _ln(h, g1[...], bb1[...])
    h = jnp.maximum(jnp.dot(h, w2[...], preferred_element_type=F32) + b2[...], 0.0)
    h = _ln(h, g2[...], bb2[...])
    dw = jnp.dot(h, w3[...], preferred_element_type=F32) + b3[...]
    o_ref[...] = jnp.where(same_ref[...] > 0.0, dw, NEG_BIG)


def bias_mlp(p, feats, same):
    m = feats.shape[0]
    tm = m
    if m > 4096:
        for cand in (4096, 2048, 1024, 512, 256, 128):
            if m % cand == 0:
                tm = cand
                break
    tile = lambda i: (i, 0)
    const = lambda i: (0, 0)
    weights = [p['w1'], p['b1'], p['g1'], p['be1'],
               p['w2'], p['b2'], p['g2'], p['be2'], p['w3'], p['b3']]
    # TODO(synk): emit an (H, N, N) lane-dense layout directly (head-gridded) for very large
    #             N to avoid the 8-lane masked stores and the host-side transpose.
    return pl.pallas_call(
        _bias_kernel,
        out_shape=jax.ShapeDtypeStruct((m, H_SA), F32),
        grid_spec=pltpu.PrefetchScalarGridSpec(
            num_scalar_prefetch=0,
            grid=(m // tm,),
            in_specs=[pl.BlockSpec((tm, 4), tile),
                      pl.BlockSpec((tm, 1), tile)]
                     + [pl.BlockSpec(w.shape, const) for w in weights],
            out_specs=pl.BlockSpec((tm, H_SA), tile)),
        compiler_params=pltpu.CompilerParams(dimension_semantics=("parallel",)),
    )(feats, same, *weights)


# ---------------------------------------------------------------------------
# Kernel 2 (per layer): MultiHeadAttention with additive distance bias.
#   Fused lane-dense Q and KV projections, per-head static lane slices for the score / PV
#   matmuls, single fused output projection, residual + LayerNorm.  bf16 MXU inputs,
#   f32 accumulation / softmax / LN.  Query-row grid marked "parallel".
# ---------------------------------------------------------------------------
def _self_attn_kernel(xq_ref, xkv_ref, bias_ref, wq_ref, bq_ref, wkv_ref, bkv_ref,
                      wo_ref, bo_ref, g_ref, b_ref, o_ref, *, H, dk, dv):
    xq = xq_ref[...]                          # (tq, D) f32 (also the residual rows)
    xkv = xkv_ref[...]                        # (N,  D) f32 full node slab (keys / values)

    q2 = jnp.dot(xq.astype(BF16), wq_ref[...],
                 preferred_element_type=F32) + bq_ref[...]          # (tq, H*dk)
    kv2 = jnp.dot(xkv.astype(BF16), wkv_ref[...],
                  preferred_element_type=F32) + bkv_ref[...]        # (N, H*dk + H*dv)

    scale = 1.0 / math.sqrt(dk)
    v_off = H * dk
    outs = []
    for h in range(H):                        # static per-head lane slices (no reshapes)
        qh = q2[:, h * dk:(h + 1) * dk].astype(BF16)                # (tq, dk)
        kh = kv2[:, h * dk:(h + 1) * dk].astype(BF16)               # (N, dk)
        vh = kv2[:, v_off + h * dv:v_off + (h + 1) * dv].astype(BF16)  # (N, dv)
        s = jnp.dot(qh, kh.T, preferred_element_type=F32) * scale   # (tq, N) lane-dense
        s = s + bias_ref[h].astype(F32)       # distance + batch mask pre-folded (bf16 in HBM)
        p = _softmax_last(s)
        outs.append(jnp.dot(p.astype(BF16), vh, preferred_element_type=F32))   # (tq, dv)

    o2 = jnp.concatenate(outs, axis=-1)       # (tq, H*dv) head-major (== torch concat order)
    out = jnp.dot(o2.astype(BF16), wo_ref[...],
                  preferred_element_type=F32) + bo_ref[...]
    o_ref[...] = _ln(xq + out, g_ref[...], b_ref[...])


def _q_tile(n):
    # prefer >=2 tiles (v7x megacore), sublane-aligned, capped at 128 rows (bias VMEM)
    for t in (128, 64, 32, 16, 8):
        if n % t == 0 and n // t >= 2:
            return t
    return n     # fallback: single untiled block (fine for small / irregular N)


def self_attn_layer(p, x, bias3_bf16):
    n, d = x.shape
    tq = _q_tile(n)
    kern = functools.partial(_self_attn_kernel, H=H_SA, dk=D_K, dv=D_V)
    const = lambda i: (0, 0)
    return pl.pallas_call(
        kern,
        out_shape=jax.ShapeDtypeStruct((n, d), F32),
        grid_spec=pltpu.PrefetchScalarGridSpec(
            num_scalar_prefetch=0,
            grid=(n // tq,),
            in_specs=[
                pl.BlockSpec((tq, d), lambda i: (i, 0)),               # query rows
                pl.BlockSpec((n, d), const),                           # full keys/values
                pl.BlockSpec((H_SA, tq, n), lambda i: (0, i, 0)),      # bf16 additive bias
                pl.BlockSpec((d, H_SA * D_K), const),                  # Wq   (bf16)
                pl.BlockSpec((1, H_SA * D_K), const),
                pl.BlockSpec((d, H_SA * (D_K + D_V)), const),          # Wkv  (bf16)
                pl.BlockSpec((1, H_SA * (D_K + D_V)), const),
                pl.BlockSpec((H_SA * D_V, d), const),                  # Wo   (bf16)
                pl.BlockSpec((1, d), const),
                pl.BlockSpec((1, d), const),
                pl.BlockSpec((1, d), const),
            ],
            out_specs=pl.BlockSpec((tq, d), lambda i: (i, 0)),
        ),
        compiler_params=pltpu.CompilerParams(
            dimension_semantics=("parallel",),
            vmem_limit_bytes=VMEM_LIMIT),
    )(x, x, bias3_bf16, p['wq_f'], p['bq'], p['wkv_f'], p['bkv'],
      p['wo_f'], p['bo'], p['ln_g'], p['ln_b'])


# ---------------------------------------------------------------------------
# Kernel 3 (per layer): fused GraphEdgeAttenNetwork block, gridded over edge tiles:
#   Gen_Index gather -> nn_edge -> projections -> strided block-diagonal attention MLP
#   -> per-head (segmented, per-head-max) softmax -> message -> scatter-max into a
#   persistent accumulator -> prop MLP (last grid step) -> optional trailing ReLU.
# ---------------------------------------------------------------------------
def _edge_block_kernel(nf_ref, ef_ref, src_ref, dst_ref,
                       we1_xi, we1_e, we1_xj, be1, we2, be2,
                       wv, bv, wq, bq, wpe, bpe,
                       wc1q, wc1e, bc1, wc2, bc2,
                       wp1_a, wp1_b, bp1, wp2, bp2,
                       nf_out_ref, ef_out_ref, prob_out_ref, agg_ref,
                       *, apply_relu, H, d_o):
    step = pl.program_id(0)
    last = pl.num_programs(0) - 1

    @pl.when(step == 0)
    def _():
        agg_ref[...] = jnp.full_like(agg_ref, NEG_FLT)

    nf = nf_ref[...]                 # (N, 64)
    ef = ef_ref[...]                 # (te, 32) edge tile
    src = src_ref[...]               # (te, 1) int32
    dst = dst_ref[...]               # (te, 1) int32
    n_nodes = nf.shape[0]
    te = ef.shape[0]
    d_msg = H * d_o

    # ---- Gen_Index (flow='target_to_source'): row gather as one-hot matmuls (MXU) ----
    # TODO(synk): for N >> 512 switch to scalar-prefetched index-driven row gather.
    node_iota = lax.broadcasted_iota(jnp.int32, (te, n_nodes), 1)
    oh_src = (node_iota == src).astype(F32)
    oh_dst = (node_iota == dst).astype(F32)
    x_i = jnp.dot(oh_src, nf, preferred_element_type=F32)          # (te, 64)
    x_j = jnp.dot(oh_dst, nf, preferred_element_type=F32)          # (te, 64)

    # ---- nn_edge: Linear-ReLU-Linear on cat([x_i, ef, x_j]) (weight rows pre-split) ----
    h1 = jnp.dot(x_i, we1_xi[...], preferred_element_type=F32)
    h1 = h1 + jnp.dot(ef, we1_e[...], preferred_element_type=F32)
    h1 = h1 + jnp.dot(x_j, we1_xj[...], preferred_element_type=F32)
    h1 = jnp.maximum(h1 + be1[...], 0.0)
    ef_new = jnp.dot(h1, we2[...], preferred_element_type=F32) + be2[...]

    # ---- projections (natural PyTorch layout: lane = channel*H + head) ----
    v_hm = jnp.dot(x_j, wv[...], preferred_element_type=F32) + bv[...]     # (te, 64)
    q_hm = jnp.dot(x_i, wq[...], preferred_element_type=F32) + bq[...]     # (te, 64)
    e_hm = jnp.dot(ef, wpe[...], preferred_element_type=F32) + bpe[...]    # (te, 32)

    # ---- attention MLP for all heads at once (strided block-diagonal shared weights) ----
    a = jnp.dot(q_hm, wc1q[...], preferred_element_type=F32)
    a = a + jnp.dot(e_hm, wc1e[...], preferred_element_type=F32)
    a = jnp.maximum(a + bc1[...], 0.0)                                     # (te, (d_n+d_e)*H)
    logits = jnp.dot(a, wc2[...], preferred_element_type=F32) + bc2[...]   # (te, 64)

    # ---- per-head softmax over the d_o channels (stride-H lane segments) ----
    li = lax.broadcasted_iota(jnp.int32, (d_msg, d_msg), 0)
    lj = lax.broadcasted_iota(jnp.int32, (d_msg, d_msg), 1)
    seg_b = (li % H) == (lj % H)
    # per-head max (fixes the weak-head underflow -> 0/0 issue)
    masked = jnp.where(seg_b[None, :, :], logits[:, :, None], NEG_FLT)     # (te, 64, 64)
    mx = jnp.max(masked, axis=1)                                           # (te, 64)
    ex = jnp.exp(logits - mx)
    den = jnp.dot(ex, seg_b.astype(F32), preferred_element_type=F32)       # segmented sum
    prob = ex / den                       # exact division (user-visible output)
    prob_out_ref[...] = prob
    msg = prob * v_hm                                                      # (te, 64)

    # ---- Aggre_Index (aggr='max') scatter onto edge_index[0]: persistent accumulator ----
    sub = min(te, 32)
    cur = jnp.full((n_nodes, d_msg), NEG_FLT, F32)
    for s0 in range(0, te, sub):
        ohs = oh_src[s0:s0 + sub]                                          # (sub, N)
        msgs = msg[s0:s0 + sub]                                            # (sub, 64)
        m3 = jnp.where(ohs[:, :, None] > 0.0, msgs[:, None, :], NEG_FLT)   # (sub, N, 64)
        cur = jnp.maximum(cur, jnp.max(m3, axis=0))
    agg_ref[...] = jnp.maximum(agg_ref[...], cur)

    if apply_relu:                        # trailing ReLU of the layer fused in (static flag)
        ef_new = jnp.maximum(ef_new, 0.0)
    ef_out_ref[...] = ef_new

    # ---- prop MLP on cat([nf, agg]) once, in the last grid step ----
    @pl.when(step == last)
    def _():
        agg = agg_ref[...]
        agg = jnp.where(agg <= NEG_FLT * 0.5, 0.0, agg)   # nodes with no out-edge -> 0
        hp = jnp.dot(nf, wp1_a[...], preferred_element_type=F32)
        hp = hp + jnp.dot(agg, wp1_b[...], preferred_element_type=F32)
        hp = jnp.maximum(hp + bp1[...], 0.0)
        nf_new = jnp.dot(hp, wp2[...], preferred_element_type=F32) + bp2[...]
        if apply_relu:
            nf_new = jnp.maximum(nf_new, 0.0)
        nf_out_ref[...] = nf_new


def edge_block(p, nf, ef, src_c, dst_c, apply_relu):
    n = nf.shape[0]
    e = ef.shape[0]
    te = e
    if e > 128:
        for cand in (128, 64, 32, 16, 8):
            if e % cand == 0:
                te = cand
                break
    kern = functools.partial(_edge_block_kernel, apply_relu=apply_relu,
                             H=NUM_HEADS, d_o=D_O)
    tile = lambda i: (i, 0)
    const = lambda i: (0, 0)
    weight_names = ['we1_xi', 'we1_e', 'we1_xj', 'be1', 'we2', 'be2',
                    'wv', 'bv', 'wq', 'bq', 'wpe', 'bpe',
                    'wc1q_bd', 'wc1e_bd', 'bc1_bd', 'wc2_bd', 'bc2_bd',
                    'wp1_a', 'wp1_b', 'bp1', 'wp2', 'bp2']
    weights = [p[k] for k in weight_names]
    # TODO(synk): fuse self_attn_layer + edge_block into one pallas_call per layer to save
    #             one nf HBM round-trip and one kernel-launch overhead.
    return pl.pallas_call(
        kern,
        out_shape=(jax.ShapeDtypeStruct((n, DIM_NODE), F32),
                   jax.ShapeDtypeStruct((e, DIM_EDGE), F32),
                   jax.ShapeDtypeStruct((e, DIM_ATTEN), F32)),
        grid_spec=pltpu.PrefetchScalarGridSpec(
            num_scalar_prefetch=0,
            grid=(e // te,),
            in_specs=[pl.BlockSpec((n, DIM_NODE), const),       # full node slab
                      pl.BlockSpec((te, DIM_EDGE), tile),       # edge tile
                      pl.BlockSpec((te, 1), tile),              # src tile
                      pl.BlockSpec((te, 1), tile)]              # dst tile
                     + [pl.BlockSpec(w.shape, const) for w in weights],
            out_specs=[pl.BlockSpec((n, DIM_NODE), const),      # node output (last step)
                       pl.BlockSpec((te, DIM_EDGE), tile),
                       pl.BlockSpec((te, DIM_ATTEN), tile)],
            scratch_shapes=[pltpu.VMEM((n, DIM_ATTEN), F32)]),  # scatter-max accumulator
        compiler_params=pltpu.CompilerParams(
            dimension_semantics=("arbitrary",),
            vmem_limit_bytes=VMEM_LIMIT),
    )(nf, ef, src_c, dst_c, *weights)


# ---------------------------------------------------------------------------
# parameter initialization (deterministic, synthetic) with host-side weight reshaping
# ---------------------------------------------------------------------------
def _linear(key, fin, fout):
    kw, kb = jax.random.split(key)
    w = jax.random.normal(kw, (fin, fout), F32) * (1.0 / math.sqrt(fin))
    b = jax.random.normal(kb, (1, fout), F32) * 0.02
    return w, b


def _strided_bd(w, reps):
    # shared per-head weight -> strided block-diagonal matrix in the natural
    # channel-major layout (lane = channel*reps + head)
    fin, fout = w.shape
    out = jnp.zeros((fin * reps, fout * reps), F32)
    for h in range(reps):
        out = out.at[h::reps, h::reps].set(w)
    return out


def init_params(key):
    keys = jax.random.split(key, 64)
    it = iter(keys)
    p = {}
    # self_attn_fc: Linear(4,32) ReLU LN(32) Linear(32,32) ReLU LN(32) Linear(32,8)
    w1, b1 = _linear(next(it), 4, 32)
    w2, b2 = _linear(next(it), 32, 32)
    w3, b3 = _linear(next(it), 32, 8)
    p['attn_fc'] = dict(
        w1=w1, b1=b1, g1=jnp.ones((1, 32), F32), be1=jnp.zeros((1, 32), F32),
        w2=w2, b2=b2, g2=jnp.ones((1, 32), F32), be2=jnp.zeros((1, 32), F32),
        w3=w3, b3=b3)

    p['self_attn'] = []
    p['gconv'] = []
    for _ in range(NUM_LAYERS):
        wq, bq = _linear(next(it), DIM_NODE, H_SA * D_K)
        wk, bk = _linear(next(it), DIM_NODE, H_SA * D_K)
        wv, bv = _linear(next(it), DIM_NODE, H_SA * D_V)
        wo, bo = _linear(next(it), H_SA * D_V, DIM_NODE)
        # fc_q/fc_k/fc_v outputs are already head-major (PyTorch .view(.., h, d_k)),
        # so the fused lane-dense weights need no permutation; K and V fused into one matmul.
        p['self_attn'].append(dict(
            wq_f=wq.astype(BF16), bq=bq,
            wkv_f=jnp.concatenate([wk, wv], axis=1).astype(BF16),
            bkv=jnp.concatenate([bk, bv], axis=1),
            wo_f=wo.astype(BF16), bo=bo,
            ln_g=jnp.ones((1, DIM_NODE), F32), ln_b=jnp.zeros((1, DIM_NODE), F32)))

        we1, be1 = _linear(next(it), 2 * DIM_NODE + DIM_EDGE, DIM_NODE + DIM_EDGE)
        we2, be2 = _linear(next(it), DIM_NODE + DIM_EDGE, DIM_EDGE)
        wpv, bpv = _linear(next(it), DIM_NODE, DIM_ATTEN)
        wpq, bpq = _linear(next(it), DIM_NODE, DIM_NODE)
        wpe, bpe = _linear(next(it), DIM_EDGE, DIM_EDGE)
        wc1, bc1 = _linear(next(it), D_N + D_E, D_N + D_E)
        wc2, bc2 = _linear(next(it), D_N + D_E, D_O)
        wp1, bp1 = _linear(next(it), DIM_NODE + DIM_ATTEN, DIM_NODE + DIM_ATTEN)
        wp2, bp2 = _linear(next(it), DIM_NODE + DIM_ATTEN, DIM_NODE)
        p['gconv'].append(dict(
            # nn_edge weight rows split so the kernel never concatenates [x_i, ef, x_j]
            we1_xi=we1[:DIM_NODE], we1_e=we1[DIM_NODE:DIM_NODE + DIM_EDGE],
            we1_xj=we1[DIM_NODE + DIM_EDGE:], be1=be1, we2=we2, be2=be2,
            # projections kept in the natural (channel-major) lane layout, no permutation
            wv=wpv, bv=bpv, wq=wpq, bq=bpq, wpe=wpe, bpe=bpe,
            # attention MLP shared across heads -> strided block-diagonal, split by [q | e] rows
            wc1q_bd=_strided_bd(wc1[:D_N, :], NUM_HEADS),
            wc1e_bd=_strided_bd(wc1[D_N:, :], NUM_HEADS),
            bc1_bd=jnp.repeat(bc1, NUM_HEADS, axis=1),
            wc2_bd=_strided_bd(wc2, NUM_HEADS),
            bc2_bd=jnp.repeat(bc2, NUM_HEADS, axis=1),
            # prop MLP rows split; aggregated message already in the natural layout
            wp1_a=wp1[:DIM_NODE], wp1_b=wp1[DIM_NODE:], bp1=bp1,
            wp2=wp2, bp2=bp2))
    return p


# ---------------------------------------------------------------------------
# full forward (tiny glue in JAX, hot paths in 1 + 2*NUM_LAYERS Pallas calls)
# ---------------------------------------------------------------------------
def forward(params, node_feature, edge_feature, edges_indices, obj_center, batch_ids):
    n_nodes = node_feature.shape[0]
    n_edges = edge_feature.shape[0]

    # distance weights + batch mask folded into one additive bias, computed ONCE per forward
    diff = obj_center[None, :, :] - obj_center[:, None, :]   # diff[r, c] = center[c] - center[r]
    dist = jnp.sqrt(jnp.sum(diff * diff, axis=-1, keepdims=True))
    feats = jnp.concatenate([diff, dist], axis=-1).reshape(n_nodes * n_nodes, 4).astype(F32)
    same = (batch_ids[:, None] == batch_ids[None, :]).reshape(n_nodes * n_nodes, 1).astype(F32)
    bias_pairs = bias_mlp(params['attn_fc'], feats, same)                       # (N*N, 8) f32
    bias3 = bias_pairs.reshape(n_nodes, n_nodes, H_SA).transpose(2, 0, 1)       # (H, N, N)
    bias3 = bias3.astype(BF16)    # bf16 halves the per-layer bias DMA into the attn kernel

    src_c = edges_indices[0].astype(jnp.int32).reshape(n_edges, 1)
    dst_c = edges_indices[1].astype(jnp.int32).reshape(n_edges, 1)

    probs = []
    nf, ef = node_feature.astype(F32), edge_feature.astype(F32)
    for i in range(NUM_LAYERS):
        nf = self_attn_layer(params['self_attn'][i], nf, bias3)
        apply_relu = (i < NUM_LAYERS - 1) or (NUM_LAYERS == 1)
        # TODO(synk): DROP_OUT_ATTEN dropout omitted (not configured; identity in eval mode)
        nf, ef, prob_flat = edge_block(params['gconv'][i], nf, ef, src_c, dst_c, apply_relu)
        # prob_flat lane = o*H + h already matches torch's (E, d_o, H): free C-order reshape
        probs.append(prob_flat.reshape(n_edges, D_O, NUM_HEADS))
    return nf, ef, probs


if __name__ == "__main__":
    key = jax.random.PRNGKey(0)
    n_nodes, n_edges = 8, 16
    k1, k2, k3, kparams = jax.random.split(key, 4)
    node_feature = jax.random.normal(k1, (n_nodes, DIM_NODE), F32)
    edge_feature = jax.random.normal(k2, (n_edges, DIM_EDGE), F32)
    obj_center = jax.random.normal(k3, (n_nodes, 3), F32)
    batch_ids = jnp.array([0, 0, 0, 0, 1, 1, 1, 1], dtype=jnp.int32)
    src = jnp.array([0, 1, 0, 2, 3, 1, 2, 3], dtype=jnp.int32)
    dst = jnp.array([1, 0, 2, 3, 1, 2, 0, 0], dtype=jnp.int32)
    edges_indices = jnp.stack([jnp.concatenate([src, src + 4]),
                               jnp.concatenate([dst, dst + 4])], axis=0)

    params = init_params(kparams)
    nf, ef, probs = forward(params, node_feature, edge_feature,
                            edges_indices, obj_center, batch_ids)
    jax.block_until_ready((nf, ef, probs))
    assert nf.shape == (n_nodes, DIM_NODE)
    assert ef.shape == (n_edges, DIM_EDGE)
    assert probs[0].shape == (n_edges, D_O, NUM_HEADS)
    assert len(probs) == NUM_LAYERS
    print("KERNEL_OK")
</pallas_src>

<mosaic_0001>
module attributes {stable_mosaic.version = 11 : i64} {
  func.func @_bias_kernel(%arg0: i32, %arg1: memref<64x4xf32, #tpu.memory_space<vmem>>, %arg2: memref<64x1xf32, #tpu.memory_space<vmem>>, %arg3: memref<4x32xf32, #tpu.memory_space<vmem>>, %arg4: memref<1x32xf32, #tpu.memory_space<vmem>>, %arg5: memref<1x32xf32, #tpu.memory_space<vmem>>, %arg6: memref<1x32xf32, #tpu.memory_space<vmem>>, %arg7: memref<32x32xf32, #tpu.memory_space<vmem>>, %arg8: memref<1x32xf32, #tpu.memory_space<vmem>>, %arg9: memref<1x32xf32, #tpu.memory_space<vmem>>, %arg10: memref<1x32xf32, #tpu.memory_space<vmem>>, %arg11: memref<32x8xf32, #tpu.memory_space<vmem>>, %arg12: memref<1x8xf32, #tpu.memory_space<vmem>>, %arg13: memref<64x8xf32, #tpu.memory_space<vmem>>) attributes {dimension_semantics = [#tpu.dimension_semantics<parallel>], iteration_bounds = array<i64: 1>, scalar_prefetch = 0 : i64, scratch_operands = 0 : i64, tpu.core_type = #tpu.core_type<tc>, window_params = [{transform_indices = @transform_0, window_bounds = array<i64: 64, 4>}, {transform_indices = @transform_1, window_bounds = array<i64: 64, 1>}, {pipeline_mode = #tpu.pipeline_mode<synchronous>, transform_indices = @transform_2, window_bounds = array<i64: 4, 32>}, {pipeline_mode = #tpu.pipeline_mode<synchronous>, transform_indices = @transform_3, window_bounds = array<i64: 1, 32>}, {pipeline_mode = #tpu.pipeline_mode<synchronous>, transform_indices = @transform_4, window_bounds = array<i64: 1, 32>}, {pipeline_mode = #tpu.pipeline_mode<synchronous>, transform_indices = @transform_5, window_bounds = array<i64: 1, 32>}, {pipeline_mode = #tpu.pipeline_mode<synchronous>, transform_indices = @transform_6, window_bounds = array<i64: 32, 32>}, {pipeline_mode = #tpu.pipeline_mode<synchronous>, transform_indices = @transform_7, window_bounds = array<i64: 1, 32>}, {pipeline_mode = #tpu.pipeline_mode<synchronous>, transform_indices = @transform_8, window_bounds = array<i64: 1, 32>}, {pipeline_mode = #tpu.pipeline_mode<synchronous>, transform_indices = @transform_9, window_bounds = array<i64: 1, 32>}, {pipeline_mode = #tpu.pipeline_mode<synchronous>, transform_indices = @transform_10, window_bounds = array<i64: 32, 8>}, {pipeline_mode = #tpu.pipeline_mode<synchronous>, transform_indices = @transform_11, window_bounds = array<i64: 1, 8>}, {transform_indices = @transform_12, window_bounds = array<i64: 64, 8>}]} {
    %c0 = arith.constant 0 : index
    %c0_0 = arith.constant 0 : index
    %0 = vector.load %arg1[%c0, %c0_0] : memref<64x4xf32, #tpu.memory_space<vmem>>, vector<64x4xf32>
    %c0_1 = arith.constant 0 : index
    %c0_2 = arith.constant 0 : index
    %1 = vector.load %arg3[%c0_1, %c0_2] : memref<4x32xf32, #tpu.memory_space<vmem>>, vector<4x32xf32>
    %cst = arith.constant dense<0.000000e+00> : vector<64x32xf32>
    %2 = tpu.matmul %0, %1, %cst {dimension_numbers = #tpu.dot_dimension_numbers<[1], [0], [0], [1], [0, 0, 1, 1], [], []>} : vector<64x4xf32>, vector<4x32xf32>, vector<64x32xf32> -> vector<64x32xf32>
    %c0_3 = arith.constant 0 : index
    %c0_4 = arith.constant 0 : index
    %3 = vector.load %arg4[%c0_3, %c0_4] : memref<1x32xf32, #tpu.memory_space<vmem>>, vector<1x32xf32>
    %4 = vector.broadcast %3 : vector<1x32xf32> to vector<64x32xf32>
    %5 = arith.addf %2, %4 : vector<64x32xf32>
    %cst_5 = arith.constant 0.000000e+00 : f32
    %6 = vector.broadcast %cst_5 : f32 to vector<64x32xf32>
    %7 = arith.maximumf %5, %6 : vector<64x32xf32>
    %c0_6 = arith.constant 0 : index
    %c0_7 = arith.constant 0 : index
    %8 = vector.load %arg5[%c0_6, %c0_7] : memref<1x32xf32, #tpu.memory_space<vmem>>, vector<1x32xf32>
    %c0_8 = arith.constant 0 : index
    %c0_9 = arith.constant 0 : index
    %9 = vector.load %arg6[%c0_8, %c0_9] : memref<1x32xf32, #tpu.memory_space<vmem>>, vector<1x32xf32>
    %cst_10 = arith.constant dense<0.000000e+00> : vector<64xf32>
    %10 = vector.multi_reduction <add>, %7, %cst_10 [1] : vector<64x32xf32> to vector<64xf32>
    %11 = vector.shape_cast %10 : vector<64xf32> to vector<64x1xf32>
    %cst_11 = arith.constant 3.200000e+01 : f32
    %12 = vector.broadcast %cst_11 : f32 to vector<64x1xf32>
    %13 = arith.divf %11, %12 : vector<64x1xf32>
    %14 = vector.broadcast %13 : vector<64x1xf32> to vector<64x32xf32>
    %15 = arith.subf %7, %14 : vector<64x32xf32>
    %16 = arith.mulf %15, %15 : vector<64x32xf32>
    %cst_12 = arith.constant dense<0.000000e+00> : vector<64xf32>
    %17 = vector.multi_reduction <add>, %16, %cst_12 [1] : vector<64x32xf32> to vector<64xf32>
    %18 = vector.shape_cast %17 : vector<64xf32> to vector<64x1xf32>
    %cst_13 = arith.constant 3.200000e+01 : f32
    %19 = vector.broadcast %cst_13 : f32 to vector<64x1xf32>
    %20 = arith.divf %18, %19 : vector<64x1xf32>
    %21 = vector.broadcast %13 : vector<64x1xf32> to vector<64x32xf32>
    %22 = arith.subf %7, %21 : vector<64x32xf32>
    %cst_14 = arith.constant 9.99999974E-6 : f32
    %23 = vector.broadcast %cst_14 : f32 to vector<64x1xf32>
    %24 = arith.addf %20, %23 : vector<64x1xf32>
    %25 = math.rsqrt %24 : vector<64x1xf32>
    %26 = vector.broadcast %25 : vector<64x1xf32> to vector<64x32xf32>
    %27 = arith.mulf %22, %26 : vector<64x32xf32>
    %28 = vector.broadcast %8 : vector<1x32xf32> to vector<64x32xf32>
    %29 = arith.mulf %27, %28 : vector<64x32xf32>
    %30 = vector.broadcast %9 : vector<1x32xf32> to vector<64x32xf32>
    %31 = arith.addf %29, %30 : vector<64x32xf32>
    %c0_15 = arith.constant 0 : index
    %c0_16 = arith.constant 0 : index
    %32 = vector.load %arg7[%c0_15, %c0_16] : memref<32x32xf32, #tpu.memory_space<vmem>>, vector<32x32xf32>
    %cst_17 = arith.constant dense<0.000000e+00> : vector<64x32xf32>
    %33 = tpu.matmul %31, %32, %cst_17 {dimension_numbers = #tpu.dot_dimension_numbers<[1], [0], [0], [1], [0, 0, 1, 1], [], []>} : vector<64x32xf32>, vector<32x32xf32>, vector<64x32xf32> -> vector<64x32xf32>
    %c0_18 = arith.constant 0 : index
    %c0_19 = arith.constant 0 : index
    %34 = vector.load %arg8[%c0_18, %c0_19] : memref<1x32xf32, #tpu.memory_space<vmem>>, vector<1x32xf32>
    %35 = vector.broadcast %34 : vector<1x32xf32> to vector<64x32xf32>
    %36 = arith.addf %33, %35 : vector<64x32xf32>
    %cst_20 = arith.constant 0.000000e+00 : f32
    %37 = vector.broadcast %cst_20 : f32 to vector<64x32xf32>
    %38 = arith.maximumf %36, %37 : vector<64x32xf32>
    %c0_21 = arith.constant 0 : index
    %c0_22 = arith.constant 0 : index
    %39 = vector.load %arg9[%c0_21, %c0_22] : memref<1x32xf32, #tpu.memory_space<vmem>>, vector<1x32xf32>
    %c0_23 = arith.constant 0 : index
    %c0_24 = arith.constant 0 : index
    %40 = vector.load %arg10[%c0_23, %c0_24] : memref<1x32xf32, #tpu.memory_space<vmem>>, vector<1x32xf32>
    %cst_25 = arith.constant dense<0.000000e+00> : vector<64xf32>
    %41 = vector.multi_reduction <add>, %38, %cst_25 [1] : vector<64x32xf32> to vector<64xf32>
    %42 = vector.shape_cast %41 : vector<64xf32> to vector<64x1xf32>
    %cst_26 = arith.constant 3.200000e+01 : f32
    %43 = vector.broadcast %cst_26 : f32 to vector<64x1xf32>
    %44 = arith.divf %42, %43 : vector<64x1xf32>
    %45 = vector.broadcast %44 : vector<64x1xf32> to vector<64x32xf32>
    %46 = arith.subf %38, %45 : vector<64x32xf32>
    %47 = arith.mulf %46, %46 : vector<64x32xf32>
    %cst_27 = arith.constant dense<0.000000e+00> : vector<64xf32>
    %48 = vector.multi_reduction <add>, %47, %cst_27 [1] : vector<64x32xf32> to vector<64xf32>
    %49 = vector.shape_cast %48 : vector<64xf32> to vector<64x1xf32>
    %cst_28 = arith.constant 3.200000e+01 : f32
    %50 = vector.broadcast %cst_28 : f32 to vector<64x1xf32>
    %51 = arith.divf %49, %50 : vector<64x1xf32>
    %52 = vector.broadcast %44 : vector<64x1xf32> to vector<64x32xf32>
    %53 = arith.subf %38, %52 : vector<64x32xf32>
    %cst_29 = arith.constant 9.99999974E-6 : f32
    %54 = vector.broadcast %cst_29 : f32 to vector<64x1xf32>
    %55 = arith.addf %51, %54 : vector<64x1xf32>
    %56 = math.rsqrt %55 : vector<64x1xf32>
    %57 = vector.broadcast %56 : vector<64x1xf32> to vector<64x32xf32>
    %58 = arith.mulf %53, %57 : vector<64x32xf32>
    %59 = vector.broadcast %39 : vector<1x32xf32> to vector<64x32xf32>
    %60 = arith.mulf %58, %59 : vector<64x32xf32>
    %61 = vector.broadcast %40 : vector<1x32xf32> to vector<64x32xf32>
    %62 = arith.addf %60, %61 : vector<64x32xf32>
    %c0_30 = arith.constant 0 : index
    %c0_31 = arith.constant 0 : index
    %63 = vector.load %arg11[%c0_30, %c0_31] : memref<32x8xf32, #tpu.memory_space<vmem>>, vector<32x8xf32>
    %cst_32 = arith.constant dense<0.000000e+00> : vector<64x8xf32>
    %64 = tpu.matmul %62, %63, %cst_32 {dimension_numbers = #tpu.dot_dimension_numbers<[1], [0], [0], [1], [0, 0, 1, 1], [], []>} : vector<64x32xf32>, vector<32x8xf32>, vector<64x8xf32> -> vector<64x8xf32>
    %c0_33 = arith.constant 0 : index
    %c0_34 = arith.constant 0 : index
    %65 = vector.load %arg12[%c0_33, %c0_34] : memref<1x8xf32, #tpu.memory_space<vmem>>, vector<1x8xf32>
    %66 = vector.broadcast %65 : vector<1x8xf32> to vector<64x8xf32>
    %67 = arith.addf %64, %66 : vector<64x8xf32>
    %c0_35 = arith.constant 0 : index
    %c0_36 = arith.constant 0 : index
    %68 = vector.load %arg2[%c0_35, %c0_36] : memref<64x1xf32, #tpu.memory_space<vmem>>, vector<64x1xf32>
    %cst_37 = arith.constant 0.000000e+00 : f32
    %69 = vector.broadcast %cst_37 : f32 to vector<64x1xf32>
    %70 = arith.cmpf ogt, %68, %69 : vector<64x1xf32>
    %cst_38 = arith.constant -1.000000e+09 : f32
    %71 = vector.shape_cast %70 : vector<64x1xi1> to vector<64x1xi1>
    %72 = vector.broadcast %71 : vector<64x1xi1> to vector<64x8xi1>
    %73 = vector.broadcast %cst_38 : f32 to vector<64x8xf32>
    %74 = arith.select %72, %67, %73 : vector<64x8xi1>, vector<64x8xf32>
    %c0_39 = arith.constant 0 : index
    %c0_40 = arith.constant 0 : index
    %75 = vector.load %arg13[%c0_39, %c0_40] : memref<64x8xf32, #tpu.memory_space<vmem>>, vector<64x8xf32>
    tpu.vector_store %arg13[%c0_39, %c0_40], %74 {strides = array<i32>} : memref<64x8xf32, #tpu.memory_space<vmem>>, vector<64x8xf32>,
    return
  }
  func.func @transform_0(%arg0: i32) -> (i32, i32) {
    %c0_i32 = arith.constant 0 : i32
    %c0_i32_0 = arith.constant 0 : i32
    return %arg0, %c0_i32 : i32, i32
  }
  func.func @transform_1(%arg0: i32) -> (i32, i32) {
    %c0_i32 = arith.constant 0 : i32
    %c0_i32_0 = arith.constant 0 : i32
    return %arg0, %c0_i32 : i32, i32
  }
  func.func @transform_2(%arg0: i32) -> (i32, i32) {
    %c0_i32 = arith.constant 0 : i32
    %c0_i32_0 = arith.constant 0 : i32
    %c0_i32_1 = arith.constant 0 : i32
    return %c0_i32, %c0_i32_0 : i32, i32
  }
  func.func @transform_3(%arg0: i32) -> (i32, i32) {
    %c0_i32 = arith.constant 0 : i32
    %c0_i32_0 = arith.constant 0 : i32
    %c0_i32_1 = arith.constant 0 : i32
    return %c0_i32, %c0_i32_0 : i32, i32
  }
  func.func @transform_4(%arg0: i32) -> (i32, i32) {
    %c0_i32 = arith.constant 0 : i32
    %c0_i32_0 = arith.constant 0 : i32
    %c0_i32_1 = arith.constant 0 : i32
    return %c0_i32, %c0_i32_0 : i32, i32
  }
  func.func @transform_5(%arg0: i32) -> (i32, i32) {
    %c0_i32 = arith.constant 0 : i32
    %c0_i32_0 = arith.constant 0 : i32
    %c0_i32_1 = arith.constant 0 : i32
    return %c0_i32, %c0_i32_0 : i32, i32
  }
  func.func @transform_6(%arg0: i32) -> (i32, i32) {
    %c0_i32 = arith.constant 0 : i32
    %c0_i32_0 = arith.constant 0 : i32
    %c0_i32_1 = arith.constant 0 : i32
    return %c0_i32, %c0_i32_0 : i32, i32
  }
  func.func @transform_7(%arg0: i32) -> (i32, i32) {
    %c0_i32 = arith.constant 0 : i32
    %c0_i32_0 = arith.constant 0 : i32
    %c0_i32_1 = arith.constant 0 : i32
    return %c0_i32, %c0_i32_0 : i32, i32
  }
  func.func @transform_8(%arg0: i32) -> (i32, i32) {
    %c0_i32 = arith.constant 0 : i32
    %c0_i32_0 = arith.constant 0 : i32
    %c0_i32_1 = arith.constant 0 : i32
    return %c0_i32, %c0_i32_0 : i32, i32
  }
  func.func @transform_9(%arg0: i32) -> (i32, i32) {
    %c0_i32 = arith.constant 0 : i32
    %c0_i32_0 = arith.constant 0 : i32
    %c0_i32_1 = arith.constant 0 : i32
    return %c0_i32, %c0_i32_0 : i32, i32
  }
  func.func @transform_10(%arg0: i32) -> (i32, i32) {
    %c0_i32 = arith.constant 0 : i32
    %c0_i32_0 = arith.constant 0 : i32
    %c0_i32_1 = arith.constant 0 : i32
    return %c0_i32, %c0_i32_0 : i32, i32
  }
  func.func @transform_11(%arg0: i32) -> (i32, i32) {
    %c0_i32 = arith.constant 0 : i32
    %c0_i32_0 = arith.constant 0 : i32
    %c0_i32_1 = arith.constant 0 : i32
    return %c0_i32, %c0_i32_0 : i32, i32
  }
  func.func @transform_12(%arg0: i32) -> (i32, i32) {
    %c0_i32 = arith.constant 0 : i32
    %c0_i32_0 = arith.constant 0 : i32
    return %arg0, %c0_i32 : i32, i32
  }
}

</mosaic_0001>

<bundles_post_ra>
// kernel: tpu_custom_call.1
= control target key start
LH: loop header
LB: loop body
LE: loop exit
PB: predicated region body
PF: predicated region fallthrough
CT: control target
= control target key end

     0   :  { %vm82_vm0 = vcmask 1043456   ;;  %vm57_vm1 = vcmask 31744   ;;  %vm201_vm2 = vcmask 261120   ;;  %vm821_vm11 = vcmask 64512   ;;  %s1336_s2 = inlined_call_operand.vmem [shape: f32[4,32], index: 2, kind: input, shape index: {}]   ;;  %s1337_s0 = inlined_call_operand.vmem [shape: f32[64,4], index: 0, kind: input, shape index: {}]   ;;  %s1338_s3 = inlined_call_operand.vmem [shape: f32[1,32], index: 3, kind: input, shape index: {}]   ;;  %s1339_s6 = inlined_call_operand.vmem [shape: f32[32,32], index: 6, kind: input, shape index: {}]   ;;  %s1340_s4 = inlined_call_operand.vmem [shape: f32[1,32], index: 4, kind: input, shape index: {}]   ;;  %s1341_s5 = inlined_call_operand.vmem [shape: f32[1,32], index: 5, kind: input, shape index: {}]   ;;  %s1342_s7 = inlined_call_operand.vmem [shape: f32[1,32], index: 7, kind: input, shape index: {}]   ;;  %s1343_s10 = inlined_call_operand.vmem [shape: f32[32,8], index: 10, kind: input, shape index: {}]   ;;  %s1344_s1 = inlined_call_operand.vmem [shape: f32[64,1], index: 1, kind: input, shape index: {}]   ;;  %s1345_s8 = inlined_call_operand.vmem [shape: f32[1,32], index: 8, kind: input, shape index: {}]   ;;  %s1346_s9 = inlined_call_operand.vmem [shape: f32[1,32], index: 9, kind: input, shape index: {}]   ;;  %s1347_s11 = inlined_call_operand.vmem [shape: f32[1,8], index: 11, kind: input, shape index: {}]   ;;  %s1348_s12 = inlined_call_operand.vmem [shape: f32[64,8], index: 12, kind: output, shape index: {}]  }
   0x1   :  { %v49_v0 = vld [vmem:[%s1336_s2] sm:$0xf]  ;;  %v42_v2 = vld [vmem:[%s1337_s0 + $0x8] sm:$0xff]  ;;  %v43_v3 = vld [vmem:[%s1337_s0 + $0x10] sm:$0xff] }
   0x2   :  { %v41_v1 = vld [vmem:[%s1337_s0] sm:$0xff]  ;;  %899 = vmatprep.subr.msk.mxu0 %vm82_vm0, %v49_v0  ;;  %969 = vmatprep.subr.msk.mxu1 %vm82_vm0, %v49_v0  ;;  %v46_v5 = vld [vmem:[%s1337_s0 + $0x28] sm:$0xff]  ;;  %v47_v6 = vld [vmem:[%s1337_s0 + $0x30] sm:$0xff] }
   0x3   :  { %901 = vmatprep.mubr.msk.f32.mxu0 %vm57_vm1, %v41_v1  ;;  %v45_v4 = vld [vmem:[%s1337_s0 + $0x20] sm:$0xff]  ;;  %900 = vmatpush3.msk.msra.mxu0 %vm82_vm0, %v49_v0  ;;  %v44_v7 = vld [vmem:[%s1337_s0 + $0x18] sm:$0xff] }
   0x4   :  { %902 = vmatmul.mubr.msk.f32.vlgmr.msra.gmra.mrb[0].mxu0 %vm57_vm1, %v42_v2  ;;  %970 = vmatpush3.msk.msra.mxu1 %vm82_vm0, %v49_v0  ;;  %v48_v8 = vld [vmem:[%s1337_s0 + $0x38] sm:$0xff]  ;;  %v834_v9 = vld [vmem:[%s1338_s3] ss:$0 sm:$0xff] }
   0x5   :  { %904 = vmatprep.mubr.msk.f32.mxu0 %vm57_vm1, %v43_v3  ;;  %907 = vmatprep.mubr.msk.f32.mxu1 %vm57_vm1, %v45_v4 }
   0x6   :  { %908 = vmatmul.mubr.msk.f32.vlgmr.msra.gmra.mrb[0].mxu1 %vm57_vm1, %v46_v5 }
   0x7   :  { %910 = vmatprep.mubr.msk.f32.mxu1 %vm57_vm1, %v47_v6 }
   0x8   :  { %905 = vmatmul.mubr.msk.f32.gmra.mrb[2].mxu0 %vm57_vm1, %v44_v7 }
   0xa   :  { %911 = vmatmul.mubr.msk.f32.gmra.mrb[2].mxu1 %vm57_vm1, %v48_v8 }
  0xd7   :  { %v903_v10 = vpop.f32.mrb[0].mxu0 }
  0xd8   :  { %v152_v11 = vpop.f32.mrb[1].mxu0  ;;  %v158_v12 = vadd.f32 %v903_v10, %v834_v9 }
  0xd9   :  { %v153_v13 = vadd.f32 %v834_v9, %v152_v11  ;;  %v909_v14 = vpop.f32.mrb[0].mxu1 }
  0xda   :  { %v172_v15 = vpop.f32.mrb[1].mxu1  ;;  %v192_v20 = vmax.f32 %v158_v12, 0.0  ;;  %v178_v30 = vadd.f32 %v909_v14, %v834_v9 }
  0xdb   :  { %v191_v16 = vmax.f32 %v153_v13, 0.0  ;;  %v906_v17 = vpop.f32.mrb[2].mxu0  ;;  %v173_v18 = vadd.f32 %v834_v9, %v172_v15 }
  0xdc   :  { %v162_v19 = vpop.f32.mrb[3].mxu0  ;;  %v168_v21 = vadd.f32 %v906_v17, %v834_v9  ;;  %v205_v32 = vsel %vm201_vm2, %v192_v20, 0.0  ;;  %v196_v35 = vmax.f32 %v178_v30, 0.0 }
  0xdd   :  { %v163_v22 = vadd.f32 %v834_v9, %v162_v19  ;;  %v202_v23 = vsel %vm201_vm2, %v191_v16, 0.0  ;;  %v912_v24 = vpop.f32.mrb[2].mxu1  ;;  %v195_v27 = vmax.f32 %v173_v18, 0.0  ;;  %v335_v18 = vld [vmem:[%s1339_s6] sm:$0xff]  ;;  %v336_v19 = vld [vmem:[%s1339_s6 + $0x8] sm:$0xff] }
  0xde   :  { %203 = vadd.xlane.f32.xlu0 %v202_v23  ;;  %v182_v25 = vpop.f32.mrb[3].mxu1  ;;  %v194_v29 = vmax.f32 %v168_v21, 0.0  ;;  %v188_v36 = vadd.f32 %v912_v24, %v834_v9  ;;  %v217_v40 = vsel %vm201_vm2, %v196_v35, 0.0  ;;  %v337_v21 = vld [vmem:[%s1339_s6 + $0x10] sm:$0xff] }
  0xdf   :  { %v193_v26 = vmax.f32 %v163_v22, 0.0  ;;  %v183_v28 = vadd.f32 %v834_v9, %v182_v25  ;;  %v214_v34 = vsel %vm201_vm2, %v195_v27, 0.0  ;;  %v338_v22 = vld [vmem:[%s1339_s6 + $0x18] sm:$0xff] }
  0xe0   :  { %v211_v37 = vsel %vm201_vm2, %v194_v29, 0.0  ;;  %v198_v39 = vmax.f32 %v188_v36, 0.0  ;;  %v957_v23 = vpack.c.bf16 %v338_v22, %v337_v21 }
  0xe1   :  { %v208_v31 = vsel %vm201_vm2, %v193_v26, 0.0  ;;  %v197_v33 = vmax.f32 %v183_v28, 0.0 }
  0xe2   :  { %209 = vadd.xlane.f32.xlu1 %v208_v31  ;;  %206 = vadd.xlane.f32.xlu0 %v205_v32  ;;  %v223_v41 = vsel %vm201_vm2, %v198_v39, 0.0 }
  0xe3   :  { %v220_v38 = vsel %vm201_vm2, %v197_v33, 0.0 }
  0xe6   :  { %212 = vadd.xlane.f32.xlu1 %v211_v37  ;;  %215 = vadd.xlane.f32.xlu0 %v214_v34 }
  0xea   :  { %218 = vadd.xlane.f32.xlu1 %v217_v40  ;;  %221 = vadd.xlane.f32.xlu0 %v220_v38 }
  0xee   :  { %224 = vadd.xlane.f32.xlu1 %v223_v41 }
 0x16b   :  { %v204_v42 = vpop.xlane.xlu0 %203 }
 0x16c   :  { %v227_v43 = vmul.f32 0.03125, %v204_v42 }
 0x16e   :  { %v1118_v44 = vsub.f32 %v191_v16, %v227_v43 }
 0x16f   :  { %v210_v45 = vpop.xlane.xlu1 %209  ;;  %v207_v46 = vpop.xlane.xlu0 %206 }
 0x170   :  { %v229_v47 = vmul.f32 0.03125, %v210_v45  ;;  %v228_v48 = vmul.f32 0.03125, %v207_v46  ;;  %v243_v49 = vmul.f32 %v1118_v44, %v1118_v44  ;;  %v844_v45 = vld [vmem:[%s1340_s4] ss:$0 sm:$0xff] }
 0x172   :  { %v1122_v50 = vsub.f32 %v193_v26, %v229_v47  ;;  %v1124_v51 = vsub.f32 %v192_v20, %v228_v48  ;;  %v251_v52 = vsel %vm201_vm2, %v243_v49, 0.0  ;;  %v953_v20 = vpack.c.bf16 %v336_v19, %v335_v18 }
 0x173   :  { %v213_v53 = vpop.xlane.xlu1 %212  ;;  %252 = vadd.xlane.f32.xlu0 %v251_v52  ;;  %v216_v54 = vpop.xlane.xlu0 %215  ;;  %v845_v52 = vld [vmem:[%s1341_s5] ss:$0 sm:$0xff] }
 0x174   :  { %v230_v55 = vmul.f32 0.03125, %v213_v53  ;;  %v231_v56 = vmul.f32 0.03125, %v216_v54  ;;  %v245_v57 = vmul.f32 %v1122_v50, %v1122_v50  ;;  %v244_v58 = vmul.f32 %v1124_v51, %v1124_v51  ;;  %954 = vmatprep.subr.bf16.mxu1 %v953_v20 }
 0x175   :  { %956 = vmatpush3.bf16.msra.mxu1 %v953_v20 }
 0x176   :  { %v1131_v59 = vsub.f32 %v194_v29, %v230_v55  ;;  %v1133_v60 = vsub.f32 %v195_v27, %v231_v56  ;;  %v257_v61 = vsel %vm201_vm2, %v245_v57, 0.0  ;;  %v254_v62 = vsel %vm201_vm2, %v244_v58, 0.0  ;;  %958 = vmatprep.subr.bf16.mxu1 %v957_v23 }
 0x177   :  { %v219_v63 = vpop.xlane.xlu1 %218  ;;  %258 = vadd.xlane.f32.xlu0 %v257_v61  ;;  %255 = vadd.xlane.f32.xlu1 %v254_v62  ;;  %v222_v0 = vpop.xlane.xlu0 %221 }
 0x178   :  { %v232_v1 = vmul.f32 0.03125, %v219_v63  ;;  %v233_v2 = vmul.f32 0.03125, %v222_v0  ;;  %v246_v3 = vmul.f32 %v1131_v59, %v1131_v59  ;;  %v247_v4 = vmul.f32 %v1133_v60, %v1133_v60 }
 0x179   :  { %960 = vmatpush3.bf16.msra.mxu1 %v957_v23 }
 0x17a   :  { %v1141_v5 = vsub.f32 %v196_v35, %v232_v1  ;;  %v1143_v6 = vsub.f32 %v197_v33, %v233_v2  ;;  %v260_v7 = vsel %vm201_vm2, %v246_v3, 0.0  ;;  %v263_v8 = vsel %vm201_vm2, %v247_v4, 0.0 }
 0x17b   :  { %v225_v9 = vpop.xlane.xlu1 %224  ;;  %261 = vadd.xlane.f32.xlu1 %v260_v7  ;;  %264 = vadd.xlane.f32.xlu0 %v263_v8 }
 0x17c   :  { %v234_v10 = vmul.f32 0.03125, %v225_v9  ;;  %v248_v11 = vmul.f32 %v1141_v5, %v1141_v5  ;;  %v249_v12 = vmul.f32 %v1143_v6, %v1143_v6 }
 0x17e   :  { %v1151_v13 = vsub.f32 %v198_v39, %v234_v10  ;;  %v266_v14 = vsel %vm201_vm2, %v248_v11, 0.0  ;;  %v269_v15 = vsel %vm201_vm2, %v249_v12, 0.0 }
 0x17f   :  { %267 = vadd.xlane.f32.xlu1 %v266_v14  ;;  %270 = vadd.xlane.f32.xlu0 %v269_v15 }
 0x180   :  { %v250_v16 = vmul.f32 %v1151_v13, %v1151_v13 }
 0x182   :  { %v272_v17 = vsel %vm201_vm2, %v250_v16, 0.0 }
 0x183   :  { %273 = vadd.xlane.f32.xlu1 %v272_v17 }
 0x200   :  { %v253_v24 = vpop.xlane.xlu0 %252 }
 0x201   :  { %v275_v25 = vmul.f32 0.03125, %v253_v24 }
 0x203   :  { %v283_v26 = vadd.f32 1e-05, %v275_v25 }
 0x204   :  { %v256_v27 = vpop.xlane.xlu1 %255  ;;  %v259_v28 = vpop.xlane.xlu0 %258 }
 0x205   :  { %974 = vrsqrt.f32 %v283_v26  ;;  %v276_v29 = vmul.f32 0.03125, %v256_v27  ;;  %v277_v30 = vmul.f32 0.03125, %v259_v28 }
 0x207   :  { %v284_v31 = vadd.f32 1e-05, %v276_v29  ;;  %v285_v32 = vadd.f32 1e-05, %v277_v30 }
 0x208   :  { %v262_v33 = vpop.xlane.xlu1 %261  ;;  %v265_v34 = vpop.xlane.xlu0 %264 }
 0x209   :  { %976 = vrsqrt.f32 %v284_v31  ;;  %v278_v35 = vmul.f32 0.03125, %v262_v33  ;;  %v279_v36 = vmul.f32 0.03125, %v265_v34 }
 0x20a   :  { %978 = vrsqrt.f32 %v285_v32 }
 0x20b   :  { %v286_v37 = vadd.f32 1e-05, %v278_v35  ;;  %v287_v38 = vadd.f32 1e-05, %v279_v36 }
 0x20c   :  { %v268_v39 = vpop.xlane.xlu1 %267  ;;  %v271_v40 = vpop.xlane.xlu0 %270 }
 0x20d   :  { %980 = vrsqrt.f32 %v286_v37  ;;  %v280_v41 = vmul.f32 0.03125, %v268_v39  ;;  %v281_v42 = vmul.f32 0.03125, %v271_v40 }
 0x20e   :  { %982 = vrsqrt.f32 %v287_v38 }
 0x20f   :  { %v975_v43 = vpop.eup %974  ;;  %v288_v46 = vadd.f32 1e-05, %v280_v41  ;;  %v289_v47 = vadd.f32 1e-05, %v281_v42 }
 0x210   :  { %v274_v48 = vpop.xlane.xlu1 %273  ;;  %v299_v49 = vmul.f32 %v975_v43, %v1118_v44 }
 0x211   :  { %984 = vrsqrt.f32 %v288_v46  ;;  %v282_v53 = vmul.f32 0.03125, %v274_v48 }
 0x212   :  { %986 = vrsqrt.f32 %v289_v47  ;;  %v313_v54 = vmul.f32 %v844_v45, %v299_v49 }
 0x213   :  { %v977_v55 = vpop.eup %976  ;;  %v290_v56 = vadd.f32 1e-05, %v282_v53 }
 0x214   :  { %v979_v57 = vpop.eup %978  ;;  %v300_v58 = vmul.f32 %v977_v55, %v1124_v51  ;;  %v327_v61 = vadd.f32 %v845_v52, %v313_v54 }
 0x215   :  { %988 = vrsqrt.f32 %v290_v56  ;;  %v301_v62 = vmul.f32 %v979_v57, %v1122_v50 }
 0x216   :  { %v314_v63 = vmul.f32 %v844_v45, %v300_v58  ;;  %921 = vmatprep.mubr.msk.f32.mxu1 %vm201_vm2, %v327_v61 }
 0x217   :  { %v981_v44 = vpop.eup %980  ;;  %v315_v0 = vmul.f32 %v844_v45, %v301_v62 }
 0x218   :  { %v983_v1 = vpop.eup %982  ;;  %v328_v2 = vadd.f32 %v845_v52, %v314_v63  ;;  %v302_v3 = vmul.f32 %v981_v44, %v1131_v59 }
 0x219   :  { %v329_v4 = vadd.f32 %v845_v52, %v315_v0  ;;  %v303_v7 = vmul.f32 %v983_v1, %v1133_v60 }
 0x21a   :  { %922 = vmatmul.mubr.msk.f32.vlgmr.msra.gmra.mrb[4].mxu1 %vm201_vm2, %v328_v2  ;;  %v316_v8 = vmul.f32 %v844_v45, %v302_v3 }
 0x21b   :  { %v985_v51 = vpop.eup %984  ;;  %924 = vmatprep.mubr.msk.f32.mxu1 %vm201_vm2, %v329_v4  ;;  %v317_v9 = vmul.f32 %v844_v45, %v303_v7 }
 0x21c   :  { %v987_v50 = vpop.eup %986  ;;  %v330_v10 = vadd.f32 %v845_v52, %v316_v8  ;;  %v304_v11 = vmul.f32 %v985_v51, %v1141_v5 }
 0x21d   :  { %v331_v12 = vadd.f32 %v845_v52, %v317_v9  ;;  %v305_v14 = vmul.f32 %v987_v50, %v1143_v6  ;;  %v846_v6 = vld [vmem:[%s1342_s7] ss:$0 sm:$0xff] }
 0x21e   :  { %925 = vmatmul.mubr.msk.f32.gmra.mrb[6].mxu1 %vm201_vm2, %v330_v10  ;;  %v318_v59 = vmul.f32 %v844_v45, %v304_v11 }
 0x21f   :  { %v989_v15 = vpop.eup %988  ;;  %927 = vmatprep.mubr.msk.f32.mxu1 %vm201_vm2, %v331_v12  ;;  %v319_v60 = vmul.f32 %v844_v45, %v305_v14 }
 0x220   :  { %v332_v16 = vadd.f32 %v845_v52, %v318_v59  ;;  %v306_v17 = vmul.f32 %v989_v15, %v1151_v13 }
 0x221   :  { %v333_v18 = vadd.f32 %v845_v52, %v319_v60 }
 0x222   :  { %928 = vmatmul.mubr.msk.f32.gmra.mrb[8].mxu1 %vm201_vm2, %v332_v16  ;;  %v320_v19 = vmul.f32 %v844_v45, %v306_v17 }
 0x223   :  { %930 = vmatprep.mubr.msk.f32.mxu1 %vm201_vm2, %v333_v18 }
 0x224   :  { %v334_v5 = vadd.f32 %v845_v52, %v320_v19 }
 0x226   :  { %931 = vmatmul.mubr.msk.f32.gmra.mrb[10].mxu1 %vm201_vm2, %v334_v5 }
 0x2ed   :  { %v923_v20 = vpop.f32.mrb[4].mxu1 }
 0x2ee   :  { %v442_v21 = vadd.f32 %v923_v20, %v846_v6  ;;  %v436_v22 = vpop.f32.mrb[5].mxu1 }
 0x2ef   :  { %v437_v23 = vadd.f32 %v846_v6, %v436_v22 }
 0x2f0   :  { %v476_v24 = vmax.f32 %v442_v21, 0.0 }
 0x2f1   :  { %v475_v25 = vmax.f32 %v437_v23, 0.0  ;;  %v926_v13 = vpop.f32.mrb[6].mxu1 }
 0x2f2   :  { %v452_v26 = vadd.f32 %v926_v13, %v846_v6  ;;  %v446_v27 = vpop.f32.mrb[7].mxu1  ;;  %v488_v28 = vsel %vm201_vm2, %v476_v24, 0.0 }
 0x2f3   :  { %v447_v29 = vadd.f32 %v846_v6, %v446_v27  ;;  %489 = vadd.xlane.f32.xlu1 %v488_v28  ;;  %v485_v30 = vsel %vm201_vm2, %v475_v25, 0.0  ;;  %v617_v27 = vld [vmem:[%s1343_s10] sm:$0xff]  ;;  %v618_v28 = vld [vmem:[%s1343_s10 + $0x8] sm:$0xff] }
 0x2f4   :  { %v478_v31 = vmax.f32 %v452_v26, 0.0  ;;  %486 = vadd.xlane.f32.xlu0 %v485_v30  ;;  %v619_v30 = vld [vmem:[%s1343_s10 + $0x10] sm:$0xff] }
 0x2f5   :  { %v477_v32 = vmax.f32 %v447_v29, 0.0  ;;  %v929_v33 = vpop.f32.mrb[8].mxu1  ;;  %v961_v29 = vpack.c.bf16 %v618_v28, %v617_v27 }
 0x2f6   :  { %v462_v34 = vadd.f32 %v929_v33, %v846_v6  ;;  %v456_v35 = vpop.f32.mrb[9].mxu1  ;;  %v494_v36 = vsel %vm201_vm2, %v478_v31, 0.0  ;;  %v1006_v33 = vmov 0  }
 0x2f7   :  { %v457_v37 = vadd.f32 %v846_v6, %v456_v35  ;;  %495 = vadd.xlane.f32.xlu1 %v494_v36  ;;  %v491_v38 = vsel %vm201_vm2, %v477_v32, 0.0  ;;  %962 = vmatprep.subr.bf16.mxu0 %v961_v29  ;;  %v759_v35 = vld [vmem:[%s1344_s1 + $0x10] sm:$0xff] }
 0x2f8   :  { %v480_v39 = vmax.f32 %v462_v34, 0.0  ;;  %492 = vadd.xlane.f32.xlu0 %v491_v38  ;;  %964 = vmatpush3.bf16.msra.mxu0 %v961_v29  ;;  %v758_v34 = vld [vmem:[%s1344_s1 + $0x8] sm:$0xff]  ;;  %vm767_vm4 = vcmp.gt.f32.partialorder %v759_v35, 0.0  ;;  %v757_v38 = vld [vmem:[%s1344_s1] sm:$0xff] }
 0x2f9   :  { %v479_v40 = vmax.f32 %v457_v37, 0.0  ;;  %v932_v41 = vpop.f32.mrb[10].mxu1  ;;  %973 = vset.pattern.permute.xlu1 %v1006_v33  ;;  %972 = vset.pattern.permute.xlu0 %v1006_v33  ;;  %vm766_vm3 = vcmp.gt.f32.partialorder %v758_v34, 0.0  ;;  %v760_v37 = vld [vmem:[%s1344_s1 + $0x18] sm:$0xff]  ;;  %vm765_vm5 = vcmp.gt.f32.partialorder %v757_v38, 0.0 }
 0x2fa   :  { %v472_v42 = vadd.f32 %v932_v41, %v846_v6  ;;  %v466_v43 = vpop.f32.mrb[11].mxu1  ;;  %v500_v45 = vsel %vm201_vm2, %v480_v39, 0.0  ;;  %v774_v36 = vsel %vm766_vm3, 1, %v1006_v33  ;;  %vm768_vm6 = vcmp.gt.f32.partialorder %v760_v37, 0.0  ;;  %v761_v41 = vld [vmem:[%s1344_s1 + $0x20] sm:$0xff] }
 0x2fb   :  { %v467_v46 = vadd.f32 %v846_v6, %v466_v43  ;;  %501 = vadd.xlane.f32.xlu1 %v500_v45  ;;  %v497_v47 = vsel %vm201_vm2, %v479_v40, 0.0  ;;  %vm769_vm7 = vcmp.gt.f32.partialorder %v761_v41, 0.0  ;;  %v762_v43 = vld [vmem:[%s1344_s1 + $0x28] sm:$0xff] }
 0x2fc   :  { %v482_v48 = vmax.f32 %v472_v42, 0.0  ;;  %498 = vadd.xlane.f32.xlu0 %v497_v47  ;;  %v776_v42 = vsel %vm768_vm6, 1, %v1006_v33  ;;  %v777_v45 = vsel %vm769_vm7, 1, %v1006_v33  ;;  %vm770_vm8 = vcmp.gt.f32.partialorder %v762_v43, 0.0 }
 0x2fd   :  { %v481_v49 = vmax.f32 %v467_v46, 0.0  ;;  %v763_v46 = vld [vmem:[%s1344_s1 + $0x30] sm:$0xff]  ;;  %v778_v47 = vsel %vm770_vm8, 1, %v1006_v33 }
 0x2fe   :  { %v506_v52 = vsel %vm201_vm2, %v482_v48, 0.0  ;;  %vm771_vm9 = vcmp.gt.f32.partialorder %v763_v46, 0.0 }
 0x2ff   :  { %507 = vadd.xlane.f32.xlu1 %v506_v52  ;;  %v503_v53 = vsel %vm201_vm2, %v481_v49, 0.0 }
 0x300   :  { %504 = vadd.xlane.f32.xlu0 %v503_v53 }
 0x380   :  { %v490_v54 = vpop.xlane.xlu1 %489 }
 0x381   :  { %v510_v55 = vmul.f32 0.03125, %v490_v54  ;;  %v487_v56 = vpop.xlane.xlu0 %486 }
 0x382   :  { %v509_v57 = vmul.f32 0.03125, %v487_v56 }
 0x383   :  { %v1203_v58 = vsub.f32 %v476_v24, %v510_v55 }
 0x384   :  { %v1205_v61 = vsub.f32 %v475_v25, %v509_v57  ;;  %v496_v62 = vpop.xlane.xlu1 %495 }
 0x385   :  { %v512_v63 = vmul.f32 0.03125, %v496_v62  ;;  %v493_v44 = vpop.xlane.xlu0 %492  ;;  %v526_v0 = vmul.f32 %v1203_v58, %v1203_v58 }
 0x386   :  { %v511_v1 = vmul.f32 0.03125, %v493_v44  ;;  %v525_v2 = vmul.f32 %v1205_v61, %v1205_v61 }
 0x387   :  { %v1211_v3 = vsub.f32 %v478_v31, %v512_v63  ;;  %v536_v4 = vsel %vm201_vm2, %v526_v0, 0.0  ;;  %v620_v31 = vld [vmem:[%s1343_s10 + $0x18] sm:$0xff] }
 0x388   :  { %v1214_v7 = vsub.f32 %v477_v32, %v511_v1  ;;  %v502_v8 = vpop.xlane.xlu1 %501  ;;  %537 = vadd.xlane.f32.xlu1 %v536_v4  ;;  %v533_v51 = vsel %vm201_vm2, %v525_v2, 0.0  ;;  %v965_v32 = vpack.c.bf16 %v620_v31, %v619_v30 }
 0x389   :  { %v514_v9 = vmul.f32 0.03125, %v502_v8  ;;  %534 = vadd.xlane.f32.xlu0 %v533_v51  ;;  %v499_v50 = vpop.xlane.xlu0 %498  ;;  %v528_v10 = vmul.f32 %v1211_v3, %v1211_v3 }
 0x38a   :  { %v513_v11 = vmul.f32 0.03125, %v499_v50  ;;  %v527_v12 = vmul.f32 %v1214_v7, %v1214_v7  ;;  %966 = vmatprep.subr.bf16.mxu0 %v965_v32 }
 0x38b   :  { %v1221_v14 = vsub.f32 %v480_v39, %v514_v9  ;;  %v542_v59 = vsel %vm201_vm2, %v528_v10, 0.0  ;;  %968 = vmatpush3.bf16.msra.mxu0 %v965_v32  ;;  %v775_v39 = vsel %vm767_vm4, 1, %v1006_v33 }
 0x38c   :  { %v1224_v15 = vsub.f32 %v479_v40, %v513_v11  ;;  %543 = vadd.xlane.f32.xlu1 %v542_v59  ;;  %v508_v60 = vpop.xlane.xlu1 %507  ;;  %v539_v16 = vsel %vm201_vm2, %v527_v12, 0.0  ;;  %v773_v40 = vsel %vm765_vm5, 1, %v1006_v33 }
 0x38d   :  { %v516_v17 = vmul.f32 0.03125, %v508_v60  ;;  %540 = vadd.xlane.f32.xlu0 %v539_v16  ;;  %v505_v18 = vpop.xlane.xlu0 %504  ;;  %v530_v19 = vmul.f32 %v1221_v14, %v1221_v14 }
 0x38e   :  { %v515_v5 = vmul.f32 0.03125, %v505_v18  ;;  %v529_v6 = vmul.f32 %v1224_v15, %v1224_v15  ;;  %v855_v18 = vld [vmem:[%s1345_s8] ss:$0 sm:$0xff] }
 0x38f   :  { %v1231_v20 = vsub.f32 %v482_v48, %v516_v17  ;;  %v548_v21 = vsel %vm201_vm2, %v530_v19, 0.0  ;;  %v764_v48 = vld [vmem:[%s1344_s1 + $0x38] sm:$0xff] }
 0x390   :  { %v1234_v22 = vsub.f32 %v481_v49, %v515_v5  ;;  %549 = vadd.xlane.f32.xlu1 %v548_v21  ;;  %v545_v23 = vsel %vm201_vm2, %v529_v6, 0.0  ;;  %v779_v49 = vsel %vm771_vm9, 1, %v1006_v33  ;;  %vm772_vm10 = vcmp.gt.f32.partialorder %v764_v48, 0.0 }
 0x391   :  { %546 = vadd.xlane.f32.xlu0 %v545_v23  ;;  %v532_v24 = vmul.f32 %v1231_v20, %v1231_v20  ;;  %v780_v52 = vsel %vm772_vm10, 1, %v1006_v33 }
 0x392   :  { %v531_v25 = vmul.f32 %v1234_v22, %v1234_v22 }
 0x393   :  { %v554_v13 = vsel %vm201_vm2, %v532_v24, 0.0  ;;  %v856_v24 = vld [vmem:[%s1346_s9] ss:$0 sm:$0xff] }
 0x394   :  { %555 = vadd.xlane.f32.xlu1 %v554_v13  ;;  %v551_v26 = vsel %vm201_vm2, %v531_v25, 0.0 }
 0x395   :  { %552 = vadd.xlane.f32.xlu0 %v551_v26 }
 0x3a5   :  { %785 = vperm.xlu1 %973, %v774_v36  }
 0x3a9   :  { %788 = vperm.xlu1 %973, %v775_v39  }
 0x3ab   :  { %782 = vperm.xlu0 %972, %v773_v40  }
 0x3ad   :  { %791 = vperm.xlu1 %973, %v776_v42  }
 0x3b1   :  { %794 = vperm.xlu1 %973, %v777_v45  }
 0x3b5   :  { %797 = vperm.xlu1 %973, %v778_v47  }
 0x3b9   :  { %800 = vperm.xlu1 %973, %v779_v49  }
 0x3bd   :  { %803 = vperm.xlu1 %973, %v780_v52  }
 0x415   :  { %v538_v53 = vpop.xlane.xlu1 %537 }
 0x416   :  { %v558_v54 = vmul.f32 0.03125, %v538_v53  ;;  %v535_v55 = vpop.xlane.xlu0 %534 }
 0x417   :  { %v557_v56 = vmul.f32 0.03125, %v535_v55 }
 0x418   :  { %v566_v57 = vadd.f32 1e-05, %v558_v54 }
 0x419   :  { %v565_v62 = vadd.f32 1e-05, %v557_v56  ;;  %v544_v63 = vpop.xlane.xlu1 %543 }
 0x41a   :  { %990 = vrsqrt.f32 %v566_v57  ;;  %v560_v44 = vmul.f32 0.03125, %v544_v63  ;;  %v541_v0 = vpop.xlane.xlu0 %540 }
 0x41b   :  { %992 = vrsqrt.f32 %v565_v62  ;;  %v559_v1 = vmul.f32 0.03125, %v541_v0 }
 0x41c   :  { %v568_v2 = vadd.f32 1e-05, %v560_v44 }
 0x41d   :  { %v567_v4 = vadd.f32 1e-05, %v559_v1  ;;  %v550_v8 = vpop.xlane.xlu1 %549 }
 0x41e   :  { %994 = vrsqrt.f32 %v568_v2  ;;  %v562_v51 = vmul.f32 0.03125, %v550_v8  ;;  %v547_v9 = vpop.xlane.xlu0 %546 }
 0x41f   :  { %996 = vrsqrt.f32 %v567_v4  ;;  %v561_v50 = vmul.f32 0.03125, %v547_v9 }
 0x420   :  { %v570_v10 = vadd.f32 1e-05, %v562_v51 }
 0x421   :  { %v569_v11 = vadd.f32 1e-05, %v561_v50  ;;  %v556_v12 = vpop.xlane.xlu1 %555 }
 0x422   :  { %998 = vrsqrt.f32 %v570_v10  ;;  %v564_v59 = vmul.f32 0.03125, %v556_v12  ;;  %v553_v60 = vpop.xlane.xlu0 %552 }
 0x423   :  { %1000 = vrsqrt.f32 %v569_v11  ;;  %v563_v16 = vmul.f32 0.03125, %v553_v60 }
 0x424   :  { %v991_v17 = vpop.eup %990  ;;  %v572_v19 = vadd.f32 1e-05, %v564_v59 }
 0x425   :  { %v993_v5 = vpop.eup %992  ;;  %v582_v6 = vmul.f32 %v991_v17, %v1203_v58  ;;  %v571_v21 = vadd.f32 1e-05, %v563_v16  ;;  %v786_v47 = vpop.permute.xlu1 %785 }
 0x426   :  { %1002 = vrsqrt.f32 %v572_v19  ;;  %v581_v23 = vmul.f32 %v993_v5, %v1205_v61  ;;  %vm806_vm13 = vcmp.eq.s32.totalorder %v786_v47, 1 }
 0x427   :  { %v596_v25 = vmul.f32 %v855_v18, %v582_v6  ;;  %1004 = vrsqrt.f32 %v571_v21 }
 0x428   :  { %v995_v13 = vpop.eup %994  ;;  %v595_v26 = vmul.f32 %v855_v18, %v581_v23 }
 0x429   :  { %v997_v27 = vpop.eup %996  ;;  %v584_v28 = vmul.f32 %v995_v13, %v1211_v3  ;;  %v610_v31 = vadd.f32 %v856_v24, %v596_v25  ;;  %v789_v48 = vpop.permute.xlu1 %788 }
 0x42a   :  { %v609_v29 = vadd.f32 %v856_v24, %v595_v26  ;;  %v583_v30 = vmul.f32 %v997_v27, %v1214_v7  ;;  %v783_v52 = vpop.permute.xlu0 %782  ;;  %vm807_vm15 = vcmp.eq.s32.totalorder %v789_v48, 1 }
 0x42b   :  { %v598_v58 = vmul.f32 %v855_v18, %v584_v28  ;;  %vm805_vm12 = vcmp.eq.s32.totalorder %v783_v52, 1 }
 0x42c   :  { %v999_v32 = vpop.eup %998  ;;  %941 = vmatprep.mubr.msk.f32.mxu0 %vm201_vm2, %v609_v29  ;;  %v597_v61 = vmul.f32 %v855_v18, %v583_v30 }
 0x42d   :  { %v1001_v33 = vpop.eup %1000  ;;  %942 = vmatmul.mubr.msk.f32.vlgmr.msra.gmra.mrb[4].mxu0 %vm201_vm2, %v610_v31  ;;  %v586_v34 = vmul.f32 %v999_v32, %v1221_v14  ;;  %v612_v37 = vadd.f32 %v856_v24, %v598_v58  ;;  %v792_v49 = vpop.permute.xlu1 %791 }
 0x42e   :  { %v611_v35 = vadd.f32 %v856_v24, %v597_v61  ;;  %v585_v36 = vmul.f32 %v1001_v33, %v1224_v15  ;;  %vm808_vm14 = vcmp.eq.s32.totalorder %v792_v49, 1 }
 0x42f   :  { %v600_v38 = vmul.f32 %v855_v18, %v586_v34 }
 0x430   :  { %v1003_v3 = vpop.eup %1002  ;;  %944 = vmatprep.mubr.msk.f32.mxu0 %vm201_vm2, %v611_v35  ;;  %v599_v7 = vmul.f32 %v855_v18, %v585_v36 }
 0x431   :  { %v1005_v39 = vpop.eup %1004  ;;  %945 = vmatmul.mubr.msk.f32.gmra.mrb[6].mxu0 %vm201_vm2, %v612_v37  ;;  %v588_v40 = vmul.f32 %v1003_v3, %v1231_v20  ;;  %v614_v43 = vadd.f32 %v856_v24, %v600_v38  ;;  %v795_v20 = vpop.permute.xlu1 %794 }
 0x432   :  { %v613_v41 = vadd.f32 %v856_v24, %v599_v7  ;;  %v587_v42 = vmul.f32 %v1005_v39, %v1234_v22  ;;  %v857_v22 = vld [vmem:[%s1347_s11] ss:$0 sm:$0xff]  ;;  %vm809_vm1 = vcmp.eq.s32.totalorder %v795_v20, 1 }
 0x433   :  { %v602_v45 = vmul.f32 %v855_v18, %v588_v40 }
 0x434   :  { %947 = vmatprep.mubr.msk.f32.mxu0 %vm201_vm2, %v613_v41  ;;  %v601_v14 = vmul.f32 %v855_v18, %v587_v42 }
 0x435   :  { %948 = vmatmul.mubr.msk.f32.gmra.mrb[8].mxu0 %vm201_vm2, %v614_v43  ;;  %v616_v46 = vadd.f32 %v856_v24, %v602_v45  ;;  %v798_v53 = vpop.permute.xlu1 %797 }
 0x436   :  { %v615_v15 = vadd.f32 %v856_v24, %v601_v14  ;;  %vm810_vm0 = vcmp.eq.s32.totalorder %v798_v53, 1 }
 0x438   :  { %950 = vmatprep.mubr.msk.f32.mxu0 %vm201_vm2, %v615_v15 }
 0x439   :  { %951 = vmatmul.mubr.msk.f32.gmra.mrb[10].mxu0 %vm201_vm2, %v616_v46  ;;  %v801_v0 = vpop.permute.xlu1 %800 }
 0x43a   :  { %vm811_vm3 = vcmp.eq.s32.totalorder %v801_v0, 1 }
 0x43d   :  { %v804_v12 = vpop.permute.xlu1 %803 }
 0x43e   :  { %vm812_vm2 = vcmp.eq.s32.totalorder %v804_v12, 1 }
 0x500   :  { %v943_v54 = vpop.f32.mrb[4].mxu0 }
 0x501   :  { %v724_v55 = vadd.f32 %v943_v54, %v857_v22  ;;  %v718_v56 = vpop.f32.mrb[5].mxu0 }
 0x502   :  { %v719_v57 = vadd.f32 %v857_v22, %v718_v56 }
 0x503   :  { %v814_v62 = vsel %vm806_vm13, %v724_v55, -1e+09 }
 0x504   :  { %823 = vst.msk [vmem:[%s1348_s12 + $0x8] sm:$0xff] %vm821_vm11, %v814_v62  ;;  %v813_v63 = vsel %vm805_vm12, %v719_v57, -1e+09  ;;  %v946_v44 = vpop.f32.mrb[6].mxu0 }
 0x505   :  { %822 = vst.msk [vmem:[%s1348_s12] sm:$0xff] %vm821_vm11, %v813_v63  ;;  %v734_v1 = vadd.f32 %v946_v44, %v857_v22  ;;  %v728_v2 = vpop.f32.mrb[7].mxu0 }
 0x506   :  { %v729_v4 = vadd.f32 %v857_v22, %v728_v2 }
 0x507   :  { %v816_v8 = vsel %vm808_vm14, %v734_v1, -1e+09 }
 0x508   :  { %825 = vst.msk [vmem:[%s1348_s12 + $0x18] sm:$0xff] %vm821_vm11, %v816_v8  ;;  %v815_v51 = vsel %vm807_vm15, %v729_v4, -1e+09  ;;  %v949_v9 = vpop.f32.mrb[8].mxu0 }
 0x509   :  { %824 = vst.msk [vmem:[%s1348_s12 + $0x10] sm:$0xff] %vm821_vm11, %v815_v51  ;;  %v744_v50 = vadd.f32 %v949_v9, %v857_v22  ;;  %v738_v10 = vpop.f32.mrb[9].mxu0 }
 0x50a   :  { %v739_v11 = vadd.f32 %v857_v22, %v738_v10 }
 0x50b   :  { %v818_v59 = vsel %vm810_vm0, %v744_v50, -1e+09 }
 0x50c   :  { %827 = vst.msk [vmem:[%s1348_s12 + $0x28] sm:$0xff] %vm821_vm11, %v818_v59  ;;  %v817_v60 = vsel %vm809_vm1, %v739_v11, -1e+09  ;;  %v952_v16 = vpop.f32.mrb[10].mxu0 }
 0x50d   :  { %826 = vst.msk [vmem:[%s1348_s12 + $0x20] sm:$0xff] %vm821_vm11, %v817_v60  ;;  %v754_v17 = vadd.f32 %v952_v16, %v857_v22  ;;  %v748_v18 = vpop.f32.mrb[11].mxu0 }
 0x50e   :  { %v749_v19 = vadd.f32 %v857_v22, %v748_v18 }
 0x50f   :  { %v820_v5 = vsel %vm812_vm2, %v754_v17, -1e+09 }
 0x510   :  { %829 = vst.msk [vmem:[%s1348_s12 + $0x38] sm:$0xff] %vm821_vm11, %v820_v5  ;;  %v819_v6 = vsel %vm811_vm3, %v749_v19, -1e+09 }
 0x511   :  { %828 = vst.msk [vmem:[%s1348_s12 + $0x30] sm:$0xff] %vm821_vm11, %v819_v6 }

</bundles_post_ra>
